<compile_context>
chip_gen: v5e
topology: v5e:2x2
jax: 0.10.0
libtpu: 0.0.40
codegen_flags: <defaults>
</compile_context>

<pallas_src>
import functools

import jax
import jax.numpy as jnp
from jax.experimental import pallas as pl
from jax.experimental.pallas import tpu as pltpu


def _round_up(a, b):
    return (a + b - 1) // b * b


# --------------------------------------------------------------------------- #
# Kernel
# --------------------------------------------------------------------------- #
def _vae_kernel(x_ref, eps_ref,                 # [TN, D] f32, [TN, Z] f32
                we1_ref, be1_ref,               # [D, H] bf16, [1, H] f32
                weh_ref, beh_ref,               # fused mu||log_var: [H, 2Z], [1, 2Z]
                wd1_ref, bd1_ref,               # [Z, H] bf16, [1, H] f32
                wdh_ref, bdh_ref,               # fused out||disp: [H, 2D], [1, 2D]
                lib_ref,                        # [1, 1] f32 in SMEM (library size)
                big_ref,                        # [TN, 2D] bf16: decoded || disp
                lat_ref,                        # [TN, 3Z] f32: mu || log_var || z
                *, Z, D):
    lib = lib_ref[0, 0]

    # ----- encoder: ReLU(x @ We1 + be1) -> fused [mu || log_var] head -----
    x = x_ref[...].astype(jnp.bfloat16)          # cast in-kernel (x read as f32)
    h = jnp.dot(x, we1_ref[...],
                preferred_element_type=jnp.float32) + be1_ref[...]
    h = jnp.maximum(h, 0.0)                                        # ReLU (f32, VPU)
    heads = jnp.dot(h.astype(jnp.bfloat16), weh_ref[...],
                    preferred_element_type=jnp.float32) + beh_ref[...]
    mu = heads[:, :Z]
    log_var = heads[:, Z:]

    # ----- reparameterize: z = eps * exp(0.5*log_var) + mu (f32) -----
    z = eps_ref[...] * jnp.exp(0.5 * log_var) + mu
    # single lane-dense store for the small latent slab: mu || log_var || z
    lat_ref[...] = jnp.concatenate([heads, z], axis=-1)

    # ----- decoder: ReLU(z @ Wd1 + bd1) -> fused [logits || disp] head -----
    hd = jnp.dot(z.astype(jnp.bfloat16), wd1_ref[...],
                 preferred_element_type=jnp.float32) + bd1_ref[...]
    hd = jnp.maximum(hd, 0.0)
    dec = jnp.dot(hd.astype(jnp.bfloat16), wdh_ref[...],
                  preferred_element_type=jnp.float32) + bdh_ref[...]
    logits = dec[:, :D]
    disp_logits = dec[:, D:]

    # numerically-stable softmax over the feature (lane) axis, in f32.
    m = jnp.max(logits, axis=-1, keepdims=True)
    e = jnp.exp(logits - m)
    s = jnp.sum(e, axis=-1, keepdims=True)
    inv = pl.reciprocal(s, approx=True)          # EUP slot
    inv = inv * (2.0 - s * inv)                  # one Newton step -> ~f32-exact
    big_ref[:, :D] = (lib * (e * inv)).astype(jnp.bfloat16)        # decoded mean
    # clamp pre-exp dispersion logits so untrained/large weights can't overflow
    big_ref[:, D:] = jnp.exp(jnp.clip(disp_logits, -30.0, 30.0)
                             ).astype(jnp.bfloat16)                # dispersion > 0


# --------------------------------------------------------------------------- #
# Tiling / VMEM budgeting
# --------------------------------------------------------------------------- #
def _vmem_cap_bytes():
    """Generation-aware VMEM ceiling (0.75x physical), 48 MiB fallback."""
    try:
        return int(pltpu.get_tpu_info().vmem_capacity_bytes) * 3 // 4
    except Exception:
        return 48 << 20       # conservative: fits v7x's 64 MiB physical VMEM


def _vmem_need_bytes(TN, D, Z, HID):
    bf16, f32 = 2, 4
    # weights/biases: single-buffered (pl.Buffered(1))
    weights = (bf16 * (D * HID + HID * 2 * Z + Z * HID + HID * 2 * D)
               + f32 * (2 * HID + 2 * Z + 2 * D))
    # tiles (double-buffered by the pipeline): x f32 in, eps f32 in,
    # big bf16 out, lat f32 out
    tiles = TN * (f32 * (D + Z) + bf16 * 2 * D + f32 * 3 * Z)
    # in-kernel f32 intermediates (dec heads, exp, probs, h/hd) + headroom
    interm = TN * f32 * (4 * D + 2 * HID + 8 * Z)
    return weights + 2 * tiles + interm + (4 << 20)


def _choose_tile(N, D, Z, HID, cap):
    """Largest batch tile that fits the VMEM cap; >=2 grid steps when possible."""
    n8 = _round_up(N, 8)
    if n8 <= 16:
        return n8                               # tiny batch: one full tile
    # 16-row multiples (bf16 output sublane packing); >=2 steps for v7x megacore
    tn = min(512, _round_up(pl.cdiv(n8, 2), 16))
    while tn > 16 and _vmem_need_bytes(tn, D, Z, HID) > cap:
        tn = max(16, _round_up(tn // 2, 16))
    return tn


# --------------------------------------------------------------------------- #
# Wrapper
# --------------------------------------------------------------------------- #
def vae_forward(x_nchw, eps, params, lib_size):
    """Fused VAE forward.

    x_nchw: [N,C,H,W] f32; eps: [N,Z] f32 ~ N(0,1); lib_size: scalar.
    Returns (decoded bf16, disp bf16, mu f32, log_var f32, z f32).
    """
    N, C, H, W = x_nchw.shape
    D = C * H * W
    Z = eps.shape[1]
    HID = params["w_e1"].shape[1]

    # NCHW -> [N, C*H*W] row-major (same order as torch .view(N, -1)).
    # Kept in f32; the bf16 cast happens in-kernel (no extra HBM pass).
    x_flat = x_nchw.reshape(N, D)
    eps_f = eps.astype(jnp.float32)
    lib_arr = jnp.asarray(lib_size, jnp.float32).reshape(1, 1)

    cap = _vmem_cap_bytes()
    TN = _choose_tile(N, D, Z, HID, cap)
    N_pad = _round_up(N, TN)
    if N_pad != N:
        # TODO(synk): mask the last tile in-kernel instead of padding when TN
        # does not divide a large batch (jnp.pad copies the whole x/eps).
        x_flat = jnp.pad(x_flat, ((0, N_pad - N), (0, 0)))
        eps_f = jnp.pad(eps_f, ((0, N_pad - N), (0, 0)))

    grid = (N_pad // TN,)

    def row_spec(width):
        return pl.BlockSpec((TN, width), lambda i: (i, 0))

    def resident_spec(arr):
        # weights/biases: fetched once (constant index_map), single VMEM buffer
        return pl.BlockSpec(arr.shape, lambda i: (0, 0),
                            pipeline_mode=pl.Buffered(1))

    weight_args = (params["w_e1"], params["b_e1"],
                   params["w_enc_heads"], params["b_enc_heads"],
                   params["w_d1"], params["b_d1"],
                   params["w_dec_heads"], params["b_dec_heads"])

    kernel = functools.partial(_vae_kernel, Z=Z, D=D)

    big, lat = pl.pallas_call(
        kernel,
        grid=grid,
        out_shape=(
            jax.ShapeDtypeStruct((N_pad, 2 * D), jnp.bfloat16),   # decoded || disp
            jax.ShapeDtypeStruct((N_pad, 3 * Z), jnp.float32),    # mu || log_var || z
        ),
        in_specs=[row_spec(D), row_spec(Z)]
                 + [resident_spec(a) for a in weight_args]
                 + [pl.BlockSpec(memory_space=pltpu.MemorySpace.SMEM)],
        out_specs=(row_spec(2 * D), row_spec(3 * Z)),
        compiler_params=pltpu.CompilerParams(
            dimension_semantics=("parallel",),
            vmem_limit_bytes=cap,
        ),
    )(x_flat, eps_f, *weight_args, lib_arr)

    decoded = big[:N, :D]            # bf16; upcast downstream only if the loss needs f32
    disp = big[:N, D:]
    mu = lat[:N, :Z]
    log_var = lat[:N, Z:2 * Z]
    z = lat[:N, 2 * Z:]
    return decoded, disp, mu, log_var, z


# --------------------------------------------------------------------------- #
# Synthetic parameters (the PyTorch module takes encoder/decoder as injected
# submodules; modeled here as 1-hidden-layer MLPs with scVI-style heads).
# --------------------------------------------------------------------------- #
def init_params(key, D, HID, Z):
    """Weights are [in, out] bf16 (MXU operands); biases f32. The two encoder
    heads (mu, log_var) and the two decoder heads (softmax logits, dispersion)
    are stored pre-fused along the output axis."""
    ks = jax.random.split(key, 7)
    s = 0.05

    def w(k, shape):
        return (s * jax.random.normal(k, shape, jnp.float32)).astype(jnp.bfloat16)

    w_mu, w_lv = w(ks[1], (HID, Z)), w(ks[2], (HID, Z))
    w_out, w_disp = w(ks[4], (HID, D)), w(ks[5], (HID, D))
    return {
        "w_e1": w(ks[0], (D, HID)),
        "b_e1": jnp.zeros((1, HID), jnp.float32),
        # columns [:Z] -> mu head, [Z:] -> log_var head
        "w_enc_heads": jnp.concatenate([w_mu, w_lv], axis=1),
        "b_enc_heads": jnp.zeros((1, 2 * Z), jnp.float32),
        "w_d1": w(ks[3], (Z, HID)),
        "b_d1": jnp.zeros((1, HID), jnp.float32),
        # columns [:D] -> softmax-mean head, [D:] -> dispersion head
        "w_dec_heads": jnp.concatenate([w_out, w_disp], axis=1),
        "b_dec_heads": jnp.zeros((1, 2 * D), jnp.float32),
    }


if __name__ == "__main__":
    # Small shapes consistent with the module's [N x C x H x W] input.
    N, C, Himg, Wimg = 2, 4, 16, 16
    D = C * Himg * Wimg      # 1024 flattened features
    HID = 32                 # encoder/decoder hidden width
    Z = 8                    # latent dim
    LIB_SIZE = 1.0e4

    key = jax.random.PRNGKey(0)
    k_x, k_eps, k_p = jax.random.split(key, 3)

    x = jax.random.uniform(k_x, (N, C, Himg, Wimg), jnp.float32)
    # eps ~ N(0,1) drawn once in plain JAX (glue); the reparameterization
    # arithmetic (eps * std + mu) happens inside the Pallas kernel.
    eps = jax.random.normal(k_eps, (N, Z), jnp.float32)

    params = init_params(k_p, D, HID, Z)

    fwd = jax.jit(vae_forward)
    decoded, disp, mu, log_var, z = jax.block_until_ready(
        fwd(x, eps, params, LIB_SIZE)
    )

    assert decoded.shape == (N, D) and disp.shape == (N, D)
    assert mu.shape == (N, Z) and log_var.shape == (N, Z) and z.shape == (N, Z)
    assert bool(jnp.all(jnp.isfinite(decoded.astype(jnp.float32))))
    assert bool(jnp.all(disp.astype(jnp.float32) > 0))
    # decoded rows are lib_size * softmax -> each row sums to lib_size
    # (bf16 output storage => slightly looser tolerance)
    row_sums = decoded.astype(jnp.float32).sum(axis=-1)
    assert bool(jnp.allclose(row_sums, LIB_SIZE, rtol=5e-3))
    print("KERNEL_OK")
</pallas_src>

<mosaic_0001>
module attributes {stable_mosaic.version = 11 : i64} {
  func.func @_vae_kernel(%arg0: i32, %arg1: memref<8x1024xf32, #tpu.memory_space<vmem>>, %arg2: memref<8x8xf32, #tpu.memory_space<vmem>>, %arg3: memref<1024x32xbf16, #tpu.memory_space<vmem>>, %arg4: memref<1x32xf32, #tpu.memory_space<vmem>>, %arg5: memref<32x16xbf16, #tpu.memory_space<vmem>>, %arg6: memref<1x16xf32, #tpu.memory_space<vmem>>, %arg7: memref<8x32xbf16, #tpu.memory_space<vmem>>, %arg8: memref<1x32xf32, #tpu.memory_space<vmem>>, %arg9: memref<32x2048xbf16, #tpu.memory_space<vmem>>, %arg10: memref<1x2048xf32, #tpu.memory_space<vmem>>, %arg11: memref<1x1xf32, #tpu.memory_space<smem>>, %arg12: memref<8x2048xbf16, #tpu.memory_space<vmem>>, %arg13: memref<8x24xf32, #tpu.memory_space<vmem>>) attributes {dimension_semantics = [#tpu.dimension_semantics<parallel>], iteration_bounds = array<i64: 1>, scalar_prefetch = 0 : i64, scratch_operands = 0 : i64, tpu.core_type = #tpu.core_type<tc>, window_params = [{transform_indices = @transform_0, window_bounds = array<i64: 8, 1024>}, {transform_indices = @transform_1, window_bounds = array<i64: 8, 8>}, {pipeline_mode = #tpu.pipeline_mode<synchronous>, transform_indices = @transform_2, window_bounds = array<i64: 1024, 32>}, {pipeline_mode = #tpu.pipeline_mode<synchronous>, transform_indices = @transform_3, window_bounds = array<i64: 1, 32>}, {pipeline_mode = #tpu.pipeline_mode<synchronous>, transform_indices = @transform_4, window_bounds = array<i64: 32, 16>}, {pipeline_mode = #tpu.pipeline_mode<synchronous>, transform_indices = @transform_5, window_bounds = array<i64: 1, 16>}, {pipeline_mode = #tpu.pipeline_mode<synchronous>, transform_indices = @transform_6, window_bounds = array<i64: 8, 32>}, {pipeline_mode = #tpu.pipeline_mode<synchronous>, transform_indices = @transform_7, window_bounds = array<i64: 1, 32>}, {pipeline_mode = #tpu.pipeline_mode<synchronous>, transform_indices = @transform_8, window_bounds = array<i64: 32, 2048>}, {pipeline_mode = #tpu.pipeline_mode<synchronous>, transform_indices = @transform_9, window_bounds = array<i64: 1, 2048>}, {transform_indices = @transform_10, window_bounds = array<i64: 1, 1>}, {transform_indices = @transform_11, window_bounds = array<i64: 8, 2048>}, {transform_indices = @transform_12, window_bounds = array<i64: 8, 24>}]} {
    %c0 = arith.constant 0 : index
    %c0_0 = arith.constant 0 : index
    %0 = memref.load %arg11[%c0, %c0_0] : memref<1x1xf32, #tpu.memory_space<smem>>
    %c0_1 = arith.constant 0 : index
    %c0_2 = arith.constant 0 : index
    %1 = vector.load %arg1[%c0_1, %c0_2] : memref<8x1024xf32, #tpu.memory_space<vmem>>, vector<8x1024xf32>
    %2 = arith.truncf %1 : vector<8x1024xf32> to vector<8x1024xbf16>
    %c0_3 = arith.constant 0 : index
    %c0_4 = arith.constant 0 : index
    %3 = vector.load %arg3[%c0_3, %c0_4] : memref<1024x32xbf16, #tpu.memory_space<vmem>>, vector<1024x32xbf16>
    %cst = arith.constant dense<0.000000e+00> : vector<8x32xf32>
    %4 = tpu.matmul %2, %3, %cst {dimension_numbers = #tpu.dot_dimension_numbers<[1], [0], [0], [1], [0, 0, 1, 1], [], []>} : vector<8x1024xbf16>, vector<1024x32xbf16>, vector<8x32xf32> -> vector<8x32xf32>
    %c0_5 = arith.constant 0 : index
    %c0_6 = arith.constant 0 : index
    %5 = vector.load %arg4[%c0_5, %c0_6] : memref<1x32xf32, #tpu.memory_space<vmem>>, vector<1x32xf32>
    %6 = vector.broadcast %5 : vector<1x32xf32> to vector<8x32xf32>
    %7 = arith.addf %4, %6 : vector<8x32xf32>
    %cst_7 = arith.constant 0.000000e+00 : f32
    %8 = vector.broadcast %cst_7 : f32 to vector<8x32xf32>
    %9 = arith.maximumf %7, %8 : vector<8x32xf32>
    %10 = arith.truncf %9 : vector<8x32xf32> to vector<8x32xbf16>
    %c0_8 = arith.constant 0 : index
    %c0_9 = arith.constant 0 : index
    %11 = vector.load %arg5[%c0_8, %c0_9] : memref<32x16xbf16, #tpu.memory_space<vmem>>, vector<32x16xbf16>
    %cst_10 = arith.constant dense<0.000000e+00> : vector<8x16xf32>
    %12 = tpu.matmul %10, %11, %cst_10 {dimension_numbers = #tpu.dot_dimension_numbers<[1], [0], [0], [1], [0, 0, 1, 1], [], []>} : vector<8x32xbf16>, vector<32x16xbf16>, vector<8x16xf32> -> vector<8x16xf32>
    %c0_11 = arith.constant 0 : index
    %c0_12 = arith.constant 0 : index
    %13 = vector.load %arg6[%c0_11, %c0_12] : memref<1x16xf32, #tpu.memory_space<vmem>>, vector<1x16xf32>
    %14 = vector.broadcast %13 : vector<1x16xf32> to vector<8x16xf32>
    %15 = arith.addf %12, %14 : vector<8x16xf32>
    %16 = vector.extract_strided_slice %15 {offsets = [0, 0], sizes = [8, 8], strides = [1, 1]} : vector<8x16xf32> to vector<8x8xf32>
    %17 = vector.extract_strided_slice %15 {offsets = [0, 8], sizes = [8, 8], strides = [1, 1]} : vector<8x16xf32> to vector<8x8xf32>
    %c0_13 = arith.constant 0 : index
    %c0_14 = arith.constant 0 : index
    %18 = vector.load %arg2[%c0_13, %c0_14] : memref<8x8xf32, #tpu.memory_space<vmem>>, vector<8x8xf32>
    %cst_15 = arith.constant 5.000000e-01 : f32
    %19 = vector.broadcast %cst_15 : f32 to vector<8x8xf32>
    %20 = arith.mulf %19, %17 : vector<8x8xf32>
    %21 = math.exp %20 : vector<8x8xf32>
    %22 = arith.mulf %18, %21 : vector<8x8xf32>
    %23 = arith.addf %22, %16 : vector<8x8xf32>
    %24 = tpu.concatenate %15, %23 in 1 : vector<8x16xf32>, vector<8x8xf32> -> vector<8x24xf32>
    %c0_16 = arith.constant 0 : index
    %c0_17 = arith.constant 0 : index
    %25 = vector.load %arg13[%c0_16, %c0_17] : memref<8x24xf32, #tpu.memory_space<vmem>>, vector<8x24xf32>
    tpu.vector_store %arg13[%c0_16, %c0_17], %24 {strides = array<i32>} : memref<8x24xf32, #tpu.memory_space<vmem>>, vector<8x24xf32>,
    %26 = arith.truncf %23 : vector<8x8xf32> to vector<8x8xbf16>
    %c0_18 = arith.constant 0 : index
    %c0_19 = arith.constant 0 : index
    %27 = vector.load %arg7[%c0_18, %c0_19] : memref<8x32xbf16, #tpu.memory_space<vmem>>, vector<8x32xbf16>
    %cst_20 = arith.constant dense<0.000000e+00> : vector<8x32xf32>
    %28 = tpu.matmul %26, %27, %cst_20 {dimension_numbers = #tpu.dot_dimension_numbers<[1], [0], [0], [1], [0, 0, 1, 1], [], []>} : vector<8x8xbf16>, vector<8x32xbf16>, vector<8x32xf32> -> vector<8x32xf32>
    %c0_21 = arith.constant 0 : index
    %c0_22 = arith.constant 0 : index
    %29 = vector.load %arg8[%c0_21, %c0_22] : memref<1x32xf32, #tpu.memory_space<vmem>>, vector<1x32xf32>
    %30 = vector.broadcast %29 : vector<1x32xf32> to vector<8x32xf32>
    %31 = arith.addf %28, %30 : vector<8x32xf32>
    %cst_23 = arith.constant 0.000000e+00 : f32
    %32 = vector.broadcast %cst_23 : f32 to vector<8x32xf32>
    %33 = arith.maximumf %31, %32 : vector<8x32xf32>
    %34 = arith.truncf %33 : vector<8x32xf32> to vector<8x32xbf16>
    %c0_24 = arith.constant 0 : index
    %c0_25 = arith.constant 0 : index
    %35 = vector.load %arg9[%c0_24, %c0_25] : memref<32x2048xbf16, #tpu.memory_space<vmem>>, vector<32x2048xbf16>
    %cst_26 = arith.constant dense<0.000000e+00> : vector<8x2048xf32>
    %36 = tpu.matmul %34, %35, %cst_26 {dimension_numbers = #tpu.dot_dimension_numbers<[1], [0], [0], [1], [0, 0, 1, 1], [], []>} : vector<8x32xbf16>, vector<32x2048xbf16>, vector<8x2048xf32> -> vector<8x2048xf32>
    %c0_27 = arith.constant 0 : index
    %c0_28 = arith.constant 0 : index
    %37 = vector.load %arg10[%c0_27, %c0_28] : memref<1x2048xf32, #tpu.memory_space<vmem>>, vector<1x2048xf32>
    %38 = vector.broadcast %37 : vector<1x2048xf32> to vector<8x2048xf32>
    %39 = arith.addf %36, %38 : vector<8x2048xf32>
    %40 = vector.extract_strided_slice %39 {offsets = [0, 0], sizes = [8, 1024], strides = [1, 1]} : vector<8x2048xf32> to vector<8x1024xf32>
    %41 = vector.extract_strided_slice %39 {offsets = [0, 1024], sizes = [8, 1024], strides = [1, 1]} : vector<8x2048xf32> to vector<8x1024xf32>
    %cst_29 = arith.constant dense<0xFF800000> : vector<8xf32>
    %42 = vector.multi_reduction <maximumf>, %40, %cst_29 [1] : vector<8x1024xf32> to vector<8xf32>
    %43 = vector.shape_cast %42 : vector<8xf32> to vector<8x1xf32>
    %44 = vector.broadcast %43 : vector<8x1xf32> to vector<8x1024xf32>
    %45 = arith.subf %40, %44 : vector<8x1024xf32>
    %46 = math.exp %45 : vector<8x1024xf32>
    %cst_30 = arith.constant dense<0.000000e+00> : vector<8xf32>
    %47 = vector.multi_reduction <add>, %46, %cst_30 [1] : vector<8x1024xf32> to vector<8xf32>
    %48 = vector.shape_cast %47 : vector<8xf32> to vector<8x1xf32>
    %49 = tpu.reciprocal %48 {approx = true} : vector<8x1xf32> -> vector<8x1xf32>
    %50 = arith.mulf %48, %49 : vector<8x1xf32>
    %cst_31 = arith.constant 2.000000e+00 : f32
    %51 = vector.broadcast %cst_31 : f32 to vector<8x1xf32>
    %52 = arith.subf %51, %50 : vector<8x1xf32>
    %53 = arith.mulf %49, %52 : vector<8x1xf32>
    %54 = vector.broadcast %53 : vector<8x1xf32> to vector<8x1024xf32>
    %55 = arith.mulf %46, %54 : vector<8x1024xf32>
    %56 = vector.broadcast %0 : f32 to vector<8x1024xf32>
    %57 = arith.mulf %56, %55 : vector<8x1024xf32>
    %58 = arith.truncf %57 : vector<8x1024xf32> to vector<8x1024xbf16>
    %c0_32 = arith.constant 0 : index
    %c0_33 = arith.constant 0 : index
    %59 = vector.load %arg12[%c0_32, %c0_33] : memref<8x2048xbf16, #tpu.memory_space<vmem>>, vector<8x1024xbf16>
    tpu.vector_store %arg12[%c0_32, %c0_33], %58 {strides = array<i32>} : memref<8x2048xbf16, #tpu.memory_space<vmem>>, vector<8x1024xbf16>,
    %cst_34 = arith.constant -3.000000e+01 : f32
    %cst_35 = arith.constant 3.000000e+01 : f32
    %60 = vector.broadcast %cst_34 : f32 to vector<8x1024xf32>
    %61 = arith.maximumf %60, %41 : vector<8x1024xf32>
    %62 = vector.broadcast %cst_35 : f32 to vector<8x1024xf32>
    %63 = arith.minimumf %62, %61 : vector<8x1024xf32>
    %64 = math.exp %63 : vector<8x1024xf32>
    %65 = arith.truncf %64 : vector<8x1024xf32> to vector<8x1024xbf16>
    %c0_36 = arith.constant 0 : index
    %c1024 = arith.constant 1024 : index
    %66 = vector.load %arg12[%c0_36, %c1024] : memref<8x2048xbf16, #tpu.memory_space<vmem>>, vector<8x1024xbf16>
    tpu.vector_store %arg12[%c0_36, %c1024], %65 {strides = array<i32>} : memref<8x2048xbf16, #tpu.memory_space<vmem>>, vector<8x1024xbf16>,
    return
  }
  func.func @transform_0(%arg0: i32) -> (i32, i32) {
    %c0_i32 = arith.constant 0 : i32
    %c0_i32_0 = arith.constant 0 : i32
    return %arg0, %c0_i32 : i32, i32
  }
  func.func @transform_1(%arg0: i32) -> (i32, i32) {
    %c0_i32 = arith.constant 0 : i32
    %c0_i32_0 = arith.constant 0 : i32
    return %arg0, %c0_i32 : i32, i32
  }
  func.func @transform_2(%arg0: i32) -> (i32, i32) {
    %c0_i32 = arith.constant 0 : i32
    %c0_i32_0 = arith.constant 0 : i32
    %c0_i32_1 = arith.constant 0 : i32
    return %c0_i32, %c0_i32_0 : i32, i32
  }
  func.func @transform_3(%arg0: i32) -> (i32, i32) {
    %c0_i32 = arith.constant 0 : i32
    %c0_i32_0 = arith.constant 0 : i32
    %c0_i32_1 = arith.constant 0 : i32
    return %c0_i32, %c0_i32_0 : i32, i32
  }
  func.func @transform_4(%arg0: i32) -> (i32, i32) {
    %c0_i32 = arith.constant 0 : i32
    %c0_i32_0 = arith.constant 0 : i32
    %c0_i32_1 = arith.constant 0 : i32
    return %c0_i32, %c0_i32_0 : i32, i32
  }
  func.func @transform_5(%arg0: i32) -> (i32, i32) {
    %c0_i32 = arith.constant 0 : i32
    %c0_i32_0 = arith.constant 0 : i32
    %c0_i32_1 = arith.constant 0 : i32
    return %c0_i32, %c0_i32_0 : i32, i32
  }
  func.func @transform_6(%arg0: i32) -> (i32, i32) {
    %c0_i32 = arith.constant 0 : i32
    %c0_i32_0 = arith.constant 0 : i32
    %c0_i32_1 = arith.constant 0 : i32
    return %c0_i32, %c0_i32_0 : i32, i32
  }
  func.func @transform_7(%arg0: i32) -> (i32, i32) {
    %c0_i32 = arith.constant 0 : i32
    %c0_i32_0 = arith.constant 0 : i32
    %c0_i32_1 = arith.constant 0 : i32
    return %c0_i32, %c0_i32_0 : i32, i32
  }
  func.func @transform_8(%arg0: i32) -> (i32, i32) {
    %c0_i32 = arith.constant 0 : i32
    %c0_i32_0 = arith.constant 0 : i32
    %c0_i32_1 = arith.constant 0 : i32
    return %c0_i32, %c0_i32_0 : i32, i32
  }
  func.func @transform_9(%arg0: i32) -> (i32, i32) {
    %c0_i32 = arith.constant 0 : i32
    %c0_i32_0 = arith.constant 0 : i32
    %c0_i32_1 = arith.constant 0 : i32
    return %c0_i32, %c0_i32_0 : i32, i32
  }
  func.func @transform_10(%arg0: i32) -> (i32, i32) {
    %c0_i32 = arith.constant 0 : i32
    %c0_i32_0 = arith.constant 0 : i32
    %c0_i32_1 = arith.constant 0 : i32
    return %c0_i32, %c0_i32_0 : i32, i32
  }
  func.func @transform_11(%arg0: i32) -> (i32, i32) {
    %c0_i32 = arith.constant 0 : i32
    %c0_i32_0 = arith.constant 0 : i32
    return %arg0, %c0_i32 : i32, i32
  }
  func.func @transform_12(%arg0: i32) -> (i32, i32) {
    %c0_i32 = arith.constant 0 : i32
    %c0_i32_0 = arith.constant 0 : i32
    return %arg0, %c0_i32 : i32, i32
  }
}

</mosaic_0001>

<bundles_post_ra>
// kernel: vae_forward.1
= control target key start
LH: loop header
LB: loop body
LE: loop exit
PB: predicated region body
PF: predicated region fallthrough
CT: control target
= control target key end

     0   :  { %vm701_vm0 = vcmask 261120   ;;  %vm746_vm1 = vcmask 1043456   ;;  %s1880_s27 = smov 120   ;;  %vm742_vm2 = vcmask 64512   ;;  %s1881_s21 = smov 16   ;;  %vm732_vm3 = vcmask 130048   ;;  %s2489_s2 = inlined_call_operand.vmem [shape: bf16[1024,32], index: 2, kind: input, shape index: {}]   ;;  %s2490_s3 = inlined_call_operand.vmem [shape: f32[1,32], index: 3, kind: input, shape index: {}]   ;;  %s2491_s0 = inlined_call_operand.vmem [shape: f32[8,1024], index: 0, kind: input, shape index: {}]   ;;  %s2492_s5 = inlined_call_operand.vmem [shape: f32[1,16], index: 5, kind: input, shape index: {}]   ;;  %s2493_s4 = inlined_call_operand.vmem [shape: bf16[32,16], index: 4, kind: input, shape index: {}]   ;;  %s2494_s6 = inlined_call_operand.vmem [shape: bf16[8,32], index: 6, kind: input, shape index: {}]   ;;  %s2495_s7 = inlined_call_operand.vmem [shape: f32[1,32], index: 7, kind: input, shape index: {}]   ;;  %s2496_s8 = inlined_call_operand.vmem [shape: bf16[32,2048], index: 8, kind: input, shape index: {}]   ;;  %s2497_s1 = inlined_call_operand.vmem [shape: f32[8,8], index: 1, kind: input, shape index: {}]   ;;  %s2498_s9 = inlined_call_operand.vmem [shape: f32[1,2048], index: 9, kind: input, shape index: {}]   ;;  %s2499_s11 = inlined_call_operand.vmem [shape: bf16[8,2048], index: 11, kind: output, shape index: {0}]   ;;  %s2500_s10 = inlined_call_operand.<no memory space> [shape: f32[1,1], index: 10, kind: input, shape index: {}]   ;;  %s2501_s12 = inlined_call_operand.vmem [shape: f32[8,24], index: 12, kind: output, shape index: {1}]  }
   0x1   :  { %v1748_v0 = vld [vmem:[%s2489_s2 + $0x38] sm:$0xff]  ;;  %v1747_v4 = vld [vmem:[%s2489_s2 + $0x30] sm:$0xff]  ;;  %v1746_v8 = vld [vmem:[%s2489_s2 + $0x28] sm:$0xff]  ;;  %vm734_vm4 = vcmask 195584  }
   0x2   :  { %v1756_v1 = vld [vmem:[%s2489_s2 + $0x78] sm:$0xff]  ;;  %575 = vmatpush.bf16.msra.mxu0 %v1748_v0  ;;  %v1755_v5 = vld [vmem:[%s2489_s2 + $0x70] sm:$0xff]  ;;  %v1754_v9 = vld [vmem:[%s2489_s2 + $0x68] sm:$0xff] }
   0x3   :  { %v1764_v2 = vld [vmem:[%s2489_s2 + $0xb8] sm:$0xff]  ;;  %588 = vmatpush.bf16.msra.mxu1 %v1756_v1  ;;  %v1763_v6 = vld [vmem:[%s2489_s2 + $0xb0] sm:$0xff]  ;;  %v1762_v10 = vld [vmem:[%s2489_s2 + $0xa8] sm:$0xff] }
   0x4   :  { %v1772_v3 = vld [vmem:[%s2489_s2 + $0xf8] sm:$0xff]  ;;  %601 = vmatpush.bf16.msra.mxu2 %v1764_v2  ;;  %v1771_v7 = vld [vmem:[%s2489_s2 + $0xf0] sm:$0xff]  ;;  %v1770_v11 = vld [vmem:[%s2489_s2 + $0xe8] sm:$0xff] }
   0x5   :  { %614 = vmatpush.bf16.msra.mxu3 %v1772_v3  ;;  %v1745_v12 = vld [vmem:[%s2489_s2 + $0x20] sm:$0xff]  ;;  %v1744_v16 = vld [vmem:[%s2489_s2 + $0x18] sm:$0xff]  ;;  %v1743_v20 = vld [vmem:[%s2489_s2 + $0x10] sm:$0xff] }
   0x6   :  { %576 = vmatpush.bf16.msra.mxu0 %v1747_v4  ;;  %v1753_v13 = vld [vmem:[%s2489_s2 + $0x60] sm:$0xff]  ;;  %v1752_v17 = vld [vmem:[%s2489_s2 + $0x58] sm:$0xff]  ;;  %v1751_v21 = vld [vmem:[%s2489_s2 + $0x50] sm:$0xff] }
   0x7   :  { %589 = vmatpush.bf16.msra.mxu1 %v1755_v5  ;;  %v1761_v14 = vld [vmem:[%s2489_s2 + $0xa0] sm:$0xff]  ;;  %v1760_v18 = vld [vmem:[%s2489_s2 + $0x98] sm:$0xff]  ;;  %v1759_v22 = vld [vmem:[%s2489_s2 + $0x90] sm:$0xff] }
   0x8   :  { %602 = vmatpush.bf16.msra.mxu2 %v1763_v6  ;;  %v1769_v15 = vld [vmem:[%s2489_s2 + $0xe0] sm:$0xff]  ;;  %v1768_v19 = vld [vmem:[%s2489_s2 + $0xd8] sm:$0xff]  ;;  %v1767_v23 = vld [vmem:[%s2489_s2 + $0xd0] sm:$0xff] }
   0x9   :  { %615 = vmatpush.bf16.msra.mxu3 %v1771_v7  ;;  %v1742_v24 = vld [vmem:[%s2489_s2 + $0x8] sm:$0xff]  ;;  %v1741_v28 = vld [vmem:[%s2489_s2] sm:$0xff]  ;;  %v1780_v32 = vld [vmem:[%s2489_s2 + $0x138] sm:$0xff] }
   0xa   :  { %577 = vmatpush.bf16.msra.mxu0 %v1746_v8  ;;  %v1750_v25 = vld [vmem:[%s2489_s2 + $0x48] sm:$0xff]  ;;  %v1749_v29 = vld [vmem:[%s2489_s2 + $0x40] sm:$0xff]  ;;  %v45_v33 = vld [vmem:[%s2491_s0 + $0x10] sm:$0xff] }
   0xb   :  { %590 = vmatpush.bf16.msra.mxu1 %v1754_v9  ;;  %v1758_v26 = vld [vmem:[%s2489_s2 + $0x88] sm:$0xff]  ;;  %v1757_v30 = vld [vmem:[%s2489_s2 + $0x80] sm:$0xff]  ;;  %v1788_v35 = vld [vmem:[%s2489_s2 + $0x178] sm:$0xff]  ;;  %v53_v40 = vpack.c.bf16 %v45_v33, %v45_v33 }
   0xc   :  { %603 = vmatpush.bf16.msra.mxu2 %v1762_v10  ;;  %v1766_v27 = vld [vmem:[%s2489_s2 + $0xc8] sm:$0xff]  ;;  %v1765_v31 = vld [vmem:[%s2489_s2 + $0xc0] sm:$0xff]  ;;  %v46_v36 = vld [vmem:[%s2491_s0 + $0x18] sm:$0xff] }
   0xd   :  { %616 = vmatpush.bf16.msra.mxu3 %v1770_v11  ;;  %v43_v34 = vld [vmem:[%s2491_s0] sm:$0xff]  ;;  %v44_v37 = vld [vmem:[%s2491_s0 + $0x8] sm:$0xff]  ;;  %v1796_v38 = vld [vmem:[%s2489_s2 + $0x1b8] sm:$0xff]  ;;  %v54_v42 = vpack.c.bf16 %v46_v36, %v46_v36 }
   0xe   :  { %578 = vmatpush.bf16.msra.mxu0 %v1745_v12  ;;  %v1804_v39 = vld [vmem:[%s2489_s2 + $0x1f8] sm:$0xff]  ;;  %v51_v41 = vpack.c.bf16 %v43_v34, %v43_v34  ;;  %v52_v43 = vpack.c.bf16 %v44_v37, %v44_v37  ;;  %v1779_v44 = vld [vmem:[%s2489_s2 + $0x130] sm:$0xff]  ;;  %v1778_v48 = vld [vmem:[%s2489_s2 + $0x128] sm:$0xff] }
   0xf   :  { %591 = vmatpush.bf16.msra.mxu1 %v1753_v13  ;;  %v1787_v45 = vld [vmem:[%s2489_s2 + $0x170] sm:$0xff]  ;;  %v1786_v49 = vld [vmem:[%s2489_s2 + $0x168] sm:$0xff]  ;;  %v1777_v52 = vld [vmem:[%s2489_s2 + $0x120] sm:$0xff] }
  0x10   :  { %604 = vmatpush.bf16.msra.mxu2 %v1761_v14  ;;  %v1795_v46 = vld [vmem:[%s2489_s2 + $0x1b0] sm:$0xff]  ;;  %v1794_v50 = vld [vmem:[%s2489_s2 + $0x1a8] sm:$0xff]  ;;  %v1785_v53 = vld [vmem:[%s2489_s2 + $0x160] sm:$0xff] }
  0x11   :  { %617 = vmatpush.bf16.msra.mxu3 %v1769_v15  ;;  %v1803_v47 = vld [vmem:[%s2489_s2 + $0x1f0] sm:$0xff]  ;;  %v1802_v51 = vld [vmem:[%s2489_s2 + $0x1e8] sm:$0xff]  ;;  %v1793_v54 = vld [vmem:[%s2489_s2 + $0x1a0] sm:$0xff] }
  0x12   :  { %579 = vmatpush.bf16.msra.mxu0 %v1744_v16  ;;  %v1801_v55 = vld [vmem:[%s2489_s2 + $0x1e0] sm:$0xff]  ;;  %v1776_v56 = vld [vmem:[%s2489_s2 + $0x118] sm:$0xff]  ;;  %v1775_v60 = vld [vmem:[%s2489_s2 + $0x110] sm:$0xff] }
  0x13   :  { %592 = vmatpush.bf16.msra.mxu1 %v1752_v17  ;;  %v1784_v57 = vld [vmem:[%s2489_s2 + $0x158] sm:$0xff]  ;;  %v1783_v61 = vld [vmem:[%s2489_s2 + $0x150] sm:$0xff]  ;;  %v1774_v0 = vld [vmem:[%s2489_s2 + $0x108] sm:$0xff] }
  0x14   :  { %605 = vmatpush.bf16.msra.mxu2 %v1760_v18  ;;  %v1792_v58 = vld [vmem:[%s2489_s2 + $0x198] sm:$0xff]  ;;  %v1791_v62 = vld [vmem:[%s2489_s2 + $0x190] sm:$0xff]  ;;  %v1782_v1 = vld [vmem:[%s2489_s2 + $0x148] sm:$0xff] }
  0x15   :  { %618 = vmatpush.bf16.msra.mxu3 %v1768_v19  ;;  %v1800_v59 = vld [vmem:[%s2489_s2 + $0x1d8] sm:$0xff]  ;;  %v1799_v63 = vld [vmem:[%s2489_s2 + $0x1d0] sm:$0xff]  ;;  %v1790_v2 = vld [vmem:[%s2489_s2 + $0x188] sm:$0xff] }
  0x16   :  { %580 = vmatpush.bf16.msra.mxu0 %v1743_v20  ;;  %v1798_v3 = vld [vmem:[%s2489_s2 + $0x1c8] sm:$0xff]  ;;  %v1773_v4 = vld [vmem:[%s2489_s2 + $0x100] sm:$0xff]  ;;  %v49_v10 = vld [vmem:[%s2491_s0 + $0x30] sm:$0xff] }
  0x17   :  { %593 = vmatpush.bf16.msra.mxu1 %v1751_v21  ;;  %v1781_v5 = vld [vmem:[%s2489_s2 + $0x140] sm:$0xff]  ;;  %v48_v8 = vld [vmem:[%s2491_s0 + $0x28] sm:$0xff]  ;;  %v50_v11 = vld [vmem:[%s2491_s0 + $0x38] sm:$0xff]  ;;  %v57_v14 = vpack.c.bf16 %v49_v10, %v49_v10 }
  0x18   :  { %606 = vmatpush.bf16.msra.mxu2 %v1759_v22  ;;  %v1789_v6 = vld [vmem:[%s2489_s2 + $0x180] sm:$0xff]  ;;  %v56_v13 = vpack.c.bf16 %v48_v8, %v48_v8  ;;  %v58_v15 = vpack.c.bf16 %v50_v11, %v50_v11  ;;  %v1806_v16 = vld [vmem:[%s2493_s4 + $0x8] sm:$0xff] }
  0x19   :  { %619 = vmatpush.bf16.msra.mxu3 %v1767_v23  ;;  %v47_v7 = vld [vmem:[%s2491_s0 + $0x20] sm:$0xff] }
  0x1a   :  { %581 = vmatpush.bf16.msra.mxu0 %v1742_v24  ;;  %v1797_v9 = vld [vmem:[%s2489_s2 + $0x1c0] sm:$0xff]  ;;  %v55_v12 = vpack.c.bf16 %v47_v7, %v47_v7 }
  0x1b   :  { %594 = vmatpush.bf16.msra.mxu1 %v1750_v25  ;;  %v1805_v22 = vld [vmem:[%s2493_s4] sm:$0xff] }
  0x1c   :  { %607 = vmatpush.bf16.msra.mxu2 %v1758_v26  ;;  %v1841_v24 = vld [vmem:[%s2490_s3] ss:$0 sm:$0xff] }
  0x1d   :  { %620 = vmatpush.bf16.msra.mxu3 %v1766_v27  ;;  %v718_v8 = vld [vmem:[%s2497_s1] sm:$0xff] }
  0x1e   :  { %582 = vmatpush.bf16.msra.mxu0 %v1741_v28 }
  0x1f   :  { %595 = vmatpush.bf16.msra.mxu1 %v1749_v29 }
  0x20   :  { %608 = vmatpush.bf16.msra.mxu2 %v1757_v30 }
  0x21   :  { %621 = vmatpush.bf16.msra.mxu3 %v1765_v31  ;;  %583 = vmatmul.bf16.vlgmr.msra.gmra.mxu0 %v51_v41 }
  0x22   :  { %627 = vmatpush.bf16.msrb.mxu0 %v1780_v32  ;;  %596 = vmatmul.bf16.vlgmr.msra.gmra.mxu1 %v52_v43 }
  0x23   :  { %640 = vmatpush.bf16.msrb.mxu1 %v1788_v35  ;;  %609 = vmatmul.bf16.vlgmr.msra.gmra.mxu2 %v53_v40 }
  0x24   :  { %653 = vmatpush.bf16.msrb.mxu2 %v1796_v38  ;;  %622 = vmatmul.bf16.vlgmr.msra.gmra.mxu3 %v54_v42 }
  0x25   :  { %666 = vmatpush.bf16.msrb.mxu3 %v1804_v39 }
  0x26   :  { %628 = vmatpush.bf16.msrb.mxu0 %v1779_v44 }
  0x27   :  { %641 = vmatpush.bf16.msrb.mxu1 %v1787_v45  ;;  %v737_v45 = vld [vmem:[%s2494_s6] sm:$0xf] }
  0x28   :  { %654 = vmatpush.bf16.msrb.mxu2 %v1795_v46  ;;  %v748_v46 = vsel %vm746_vm1, %v737_v45, 0 }
  0x29   :  { %667 = vmatpush.bf16.msrb.mxu3 %v1803_v47  ;;  %v1842_v47 = vld [vmem:[%s2492_s5] ss:$0 sm:$0xff] }
  0x2a   :  { %629 = vmatpush.bf16.msrb.mxu0 %v1778_v48 }
  0x2b   :  { %642 = vmatpush.bf16.msrb.mxu1 %v1786_v49 }
  0x2c   :  { %655 = vmatpush.bf16.msrb.mxu2 %v1794_v50 }
  0x2d   :  { %668 = vmatpush.bf16.msrb.mxu3 %v1802_v51 }
  0x2e   :  { %630 = vmatpush.bf16.msrb.mxu0 %v1777_v52 }
  0x2f   :  { %643 = vmatpush.bf16.msrb.mxu1 %v1785_v53 }
  0x30   :  { %656 = vmatpush.bf16.msrb.mxu2 %v1793_v54  ;;  %v1655_v54 = vld [vmem:[%s2496_s8 + $0x80] sm:$0xf] }
  0x31   :  { %669 = vmatpush.bf16.msrb.mxu3 %v1801_v55  ;;  %v1831_v55 = vld [vmem:[%s2496_s8 + $0xbc] sm:$0xf0] }
  0x32   :  { %631 = vmatpush.bf16.msrb.mxu0 %v1776_v56  ;;  %v1823_v56 = vld [vmem:[%s2496_s8 + $0x84] sm:$0xf] }
  0x33   :  { %644 = vmatpush.bf16.msrb.mxu1 %v1784_v57  ;;  %v1656_v57 = vor.u32 %v1831_v55, %v1655_v54  ;;  %v1828_v54 = vld [vmem:[%s2496_s8 + $0xac] sm:$0xf] }
  0x34   :  { %657 = vmatpush.bf16.msrb.mxu2 %v1792_v58  ;;  %v1657_v58 = vld [vmem:[%s2496_s8 + $0xc0] sm:$0xf0]  ;;  %v1697_v55 = vld [vmem:[%s2496_s8 + $0xe8] sm:$0xf0] }
  0x35   :  { %670 = vmatpush.bf16.msrb.mxu3 %v1800_v59  ;;  %v1663_v59 = vld [vmem:[%s2496_s8 + $0x88] sm:$0xf] }
  0x36   :  { %632 = vmatpush.bf16.msrb.mxu0 %v1775_v60  ;;  %v1832_v60 = vld [vmem:[%s2496_s8 + $0xc4] sm:$0xf0] }
  0x37   :  { %645 = vmatpush.bf16.msrb.mxu1 %v1783_v61  ;;  %v1660_v61 = vor.u32 %v1823_v56, %v1657_v58 }
  0x38   :  { %658 = vmatpush.bf16.msrb.mxu2 %v1791_v62  ;;  %v1664_v62 = vor.u32 %v1832_v60, %v1663_v59  ;;  %v1623_v59 = vld [vmem:[%s2496_s8 + $0x20] sm:$0xf] }
  0x39   :  { %671 = vmatpush.bf16.msrb.mxu3 %v1799_v63  ;;  %v1824_v63 = vld [vmem:[%s2496_s8 + $0x8c] sm:$0xf]  ;;  %v1819_v60 = vld [vmem:[%s2496_s8 + $0x5c] sm:$0xf0] }
  0x3a   :  { %633 = vmatpush.bf16.msrb.mxu0 %v1774_v0  ;;  %v1665_v0 = vld [vmem:[%s2496_s8 + $0xc8] sm:$0xf0] }
  0x3b   :  { %646 = vmatpush.bf16.msrb.mxu1 %v1782_v1  ;;  %v1591_v1 = vld [vmem:[%s2496_s8] sm:$0xf] }
  0x3c   :  { %659 = vmatpush.bf16.msrb.mxu2 %v1790_v2  ;;  %v1668_v2 = vor.u32 %v1824_v63, %v1665_v0  ;;  %v1811_v63 = vld [vmem:[%s2496_s8 + $0x24] sm:$0xf] }
  0x3d   :  { %672 = vmatpush.bf16.msrb.mxu3 %v1798_v3  ;;  %v1815_v3 = vld [vmem:[%s2496_s8 + $0x3c] sm:$0xf0]  ;;  %v1625_v0 = vld [vmem:[%s2496_s8 + $0x60] sm:$0xf0] }
  0x3e   :  { %634 = vmatpush.bf16.msrb.mxu0 %v1773_v4  ;;  %v1807_v4 = vld [vmem:[%s2496_s8 + $0x4] sm:$0xf] }
  0x3f   :  { %647 = vmatpush.bf16.msrb.mxu1 %v1781_v5  ;;  %v1593_v5 = vld [vmem:[%s2496_s8 + $0x40] sm:$0xf0] }
  0x40   :  { %660 = vmatpush.bf16.msrb.mxu2 %v1789_v6  ;;  %v1592_v6 = vor.u32 %v1815_v3, %v1591_v1  ;;  %v1596_v7 = vor.u32 %v1807_v4, %v1593_v5  ;;  %v1631_v1 = vld [vmem:[%s2496_s8 + $0x28] sm:$0xf]  ;;  %v1812_v3 = vld [vmem:[%s2496_s8 + $0x2c] sm:$0xf] }
  0x41   :  { %673 = vmatpush.bf16.msrb.mxu3 %v1797_v9  ;;  %635 = vmatmul.bf16.vlgmr.msrb.gmra.mxu0 %v55_v12  ;;  %v1633_v4 = vld [vmem:[%s2496_s8 + $0x68] sm:$0xf0] }
  0x42   :  { %648 = vmatmul.bf16.vlgmr.msrb.gmra.mxu1 %v56_v13  ;;  %711 = vmatpush.bf16.msra.mxu0 %v1806_v16  ;;  %v1599_v13 = vld [vmem:[%s2496_s8 + $0x8] sm:$0xf] }
  0x43   :  { %661 = vmatmul.bf16.vlgmr.msrb.gmra.mxu2 %v57_v14  ;;  %757 = vmatpush.bf16.msra.mxu1 %v748_v46  ;;  %v1816_v14 = vld [vmem:[%s2496_s8 + $0x44] sm:$0xf0]  ;;  %v1687_v46 = vld [vmem:[%s2496_s8 + $0xa0] sm:$0xf] }
  0x44   :  { %674 = vmatmul.bf16.vlgmr.msrb.gmra.mxu3 %v58_v15  ;;  %1002 = vmatpush.bf16.msra.mxu2 %v1656_v57  ;;  %v1808_v15 = vld [vmem:[%s2496_s8 + $0xc] sm:$0xf]  ;;  %v1600_v16 = vor.u32 %v1816_v14, %v1599_v13  ;;  %v1829_v13 = vld [vmem:[%s2496_s8 + $0xb4] sm:$0xf] }
  0x45   :  { %1015 = vmatpush.bf16.msra.mxu3 %v1660_v61  ;;  %v1705_v14 = vld [vmem:[%s2496_s8 + $0xf0] sm:$0xf0] }
  0x46   :  { %712 = vmatpush.bf16.msra.mxu0 %v1805_v22 }
  0x47   :  { %1041 = vmatpush.bf16.msrb.mxu1 %v1668_v2  ;;  %v1820_v2 = vld [vmem:[%s2496_s8 + $0x64] sm:$0xf0] }
  0x48   :  { %1003 = vmatpush.bf16.msra.mxu2 %v1592_v6  ;;  %v1624_v6 = vor.u32 %v1819_v60, %v1623_v59 }
  0x49   :  { %1016 = vmatpush.bf16.msra.mxu3 %v1596_v7  ;;  %v1628_v7 = vor.u32 %v1811_v63, %v1625_v0 }
  0x4a   :  { %1028 = vmatpush.bf16.msrb.mxu0 %v1664_v62  ;;  %v1700_v62 = vor.u32 %v1828_v54, %v1697_v55 }
  0x4e   :  { %1029 = vmatpush.bf16.msrb.mxu0 %v1600_v16  ;;  %v1838_v16 = vld [vmem:[%s2496_s8 + $0xf4] sm:$0xf0] }
  0x9e   :  { %v584_v17 = vpop.f32.mrf.mxu0 }
  0x9f   :  { %v597_v18 = vpop.f32.mrf.mxu1  ;;  %v585_v27 = vadd.f32 %v1841_v24, %v584_v17  ;;  %v1601_v17 = vld [vmem:[%s2496_s8 + $0x48] sm:$0xf0]  ;;  %v1679_v24 = vld [vmem:[%s2496_s8 + $0x98] sm:$0xf] }
  0xa1   :  { %v598_v28 = vadd.f32 %v597_v18, %v585_v27  ;;  %v1604_v18 = vor.u32 %v1808_v15, %v1601_v17  ;;  %v1711_v15 = vld [vmem:[%s2496_s8 + $0xb8] sm:$0xf]  ;;  %v1830_v17 = vld [vmem:[%s2496_s8 + $0xbc] sm:$0xf] }
  0xa3   :  { %1042 = vmatpush.bf16.msrb.mxu1 %v1604_v18  ;;  %v1713_v18 = vld [vmem:[%s2496_s8 + $0xf8] sm:$0xf0] }
  0xa6   :  { %v610_v19 = vpop.f32.mrf.mxu2  ;;  %v586_v21 = vpop.f32.mrf.mxu0 }
  0xa7   :  { %v623_v20 = vpop.f32.mrf.mxu3  ;;  %v599_v23 = vpop.f32.mrf.mxu1  ;;  %v611_v29 = vadd.f32 %v610_v19, %v598_v28  ;;  %v1671_v19 = vld [vmem:[%s2496_s8 + $0x90] sm:$0xf]  ;;  %v1825_v21 = vld [vmem:[%s2496_s8 + $0x94] sm:$0xf]  ;;  %v1826_v28 = vld [vmem:[%s2496_s8 + $0x9c] sm:$0xf] }
  0xa8   :  { %v1673_v23 = vld [vmem:[%s2496_s8 + $0xd0] sm:$0xf0] }
  0xa9   :  { %v624_v30 = vadd.f32 %v623_v20, %v611_v29  ;;  %v1833_v20 = vld [vmem:[%s2496_s8 + $0xcc] sm:$0xf0]  ;;  %v1681_v29 = vld [vmem:[%s2496_s8 + $0xd8] sm:$0xf0] }
  0xaa   :  { %v1672_v22 = vor.u32 %v1833_v20, %v1671_v19  ;;  %v1708_v20 = vor.u32 %v1829_v13, %v1705_v14 }
  0xac   :  { %1054 = vmatpush.bf16.msrb.mxu2 %v1672_v22  ;;  %v1821_v22 = vld [vmem:[%s2496_s8 + $0x6c] sm:$0xf0] }
  0xae   :  { %v612_v25 = vpop.f32.mrf.mxu2 }
  0xaf   :  { %v625_v26 = vpop.f32.mrf.mxu3  ;;  %v1834_v25 = vld [vmem:[%s2496_s8 + $0xd4] sm:$0xf0] }
  0xb0   :  { %v1676_v26 = vor.u32 %v1825_v21, %v1673_v23  ;;  %v1680_v27 = vor.u32 %v1834_v25, %v1679_v24  ;;  %v1639_v21 = vld [vmem:[%s2496_s8 + $0x30] sm:$0xf]  ;;  %v1712_v23 = vor.u32 %v1838_v16, %v1711_v15  ;;  %v1716_v24 = vor.u32 %v1830_v17, %v1713_v18  ;;  %v1813_v25 = vld [vmem:[%s2496_s8 + $0x34] sm:$0xf] }
  0xb2   :  { %1067 = vmatpush.bf16.msrb.mxu3 %v1676_v26  ;;  %v1641_v26 = vld [vmem:[%s2496_s8 + $0x70] sm:$0xf0] }
  0xbe   :  { %v636_v31 = vpop.f32.mrf.mxu0 }
  0xbf   :  { %v649_v32 = vpop.f32.mrf.mxu1  ;;  %v637_v33 = vadd.f32 %v636_v31, %v624_v30  ;;  %v1607_v30 = vld [vmem:[%s2496_s8 + $0x10] sm:$0xf]  ;;  %v1684_v31 = vor.u32 %v1826_v28, %v1681_v29  ;;  %v1822_v28 = vld [vmem:[%s2496_s8 + $0x74] sm:$0xf0]  ;;  %v1814_v29 = vld [vmem:[%s2496_s8 + $0x3c] sm:$0xf] }
  0xc1   :  { %v650_v34 = vadd.f32 %v649_v32, %v637_v33  ;;  %v1817_v32 = vld [vmem:[%s2496_s8 + $0x4c] sm:$0xf0]  ;;  %v1809_v33 = vld [vmem:[%s2496_s8 + $0x14] sm:$0xf] }
  0xc6   :  { %v662_v35 = vpop.f32.mrf.mxu2  ;;  %v638_v38 = vpop.f32.mrf.mxu0 }
  0xc7   :  { %v675_v36 = vpop.f32.mrf.mxu3  ;;  %v663_v37 = vadd.f32 %v662_v35, %v650_v34  ;;  %v651_v39 = vpop.f32.mrf.mxu1  ;;  %v1609_v34 = vld [vmem:[%s2496_s8 + $0x50] sm:$0xf0]  ;;  %v1608_v35 = vor.u32 %v1817_v32, %v1607_v30  ;;  %v1818_v38 = vld [vmem:[%s2496_s8 + $0x54] sm:$0xf0]  ;;  %v1649_v30 = vld [vmem:[%s2496_s8 + $0x78] sm:$0xf0]  ;;  %v1644_v32 = vor.u32 %v1813_v25, %v1641_v26 }
  0xc8   :  { %v1810_v39 = vld [vmem:[%s2496_s8 + $0x1c] sm:$0xf] }
  0xc9   :  { %v676_v40 = vadd.f32 %v675_v36, %v663_v37  ;;  %v1612_v36 = vor.u32 %v1809_v33, %v1609_v34  ;;  %v1615_v37 = vld [vmem:[%s2496_s8 + $0x18] sm:$0xf]  ;;  %1055 = vmatpush.bf16.msrb.mxu2 %v1608_v35  ;;  %v1652_v34 = vor.u32 %v1814_v29, %v1649_v30 }
  0xcb   :  { %v679_v41 = vmax.f32 %v676_v40, 0.0  ;;  %v1616_v40 = vor.u32 %v1818_v38, %v1615_v37  ;;  %1068 = vmatpush.bf16.msrb.mxu3 %v1612_v36 }
  0xcd   :  { %v680_v42 = vpack.c.bf16 %v679_v41, %v679_v41  ;;  %v1617_v41 = vld [vmem:[%s2496_s8 + $0x58] sm:$0xf0] }
  0xce   :  { %v664_v43 = vpop.f32.mrf.mxu2 }
  0xcf   :  { %v677_v44 = vpop.f32.mrf.mxu3  ;;  %1587 = vmatmul.msk.bf16.vlgmr.msra.gmra.mxu0 %vm701_vm0, %v680_v42  ;;  %v1620_v42 = vor.u32 %v1810_v39, %v1617_v41  ;;  %v1843_v43 = vld [vmem:[%s2495_s7] ss:$0 sm:$0xff] }
  0xd0   :  { %1080 = vmatpush.bf16.msra.mxu0 %v1680_v27  ;;  %v1647_v27 = vld [vmem:[%s2496_s8 + $0x38] sm:$0xf]  ;;  %v797_v41 = vld [vmem:[%s2498_s9] sm:$0xff] }
  0xd1   :  { %v1648_v33 = vor.u32 %v1822_v28, %v1647_v27  ;;  %v805_v55 = vperm.slane %v797_v41, 4 }
  0xd4   :  { %1081 = vmatpush.bf16.msra.mxu0 %v1616_v40 }
 0x14c   :  { %v714_v48 = vpop.f32.mrf.mxu0 }
 0x14d   :  { %v2179_v49 = vadd.f32 %v1842_v47, %v714_v48  ;;  %v1835_v47 = vld [vmem:[%s2496_s8 + $0xdc] sm:$0xf0]  ;;  %v1827_v48 = vld [vmem:[%s2496_s8 + $0xa4] sm:$0xf] }
 0x14e   :  { %v1688_v57 = vor.u32 %v1835_v47, %v1687_v46  ;;  %v803_v46 = vperm.slane %v797_v41, 2  ;;  %v804_v47 = vperm.slane %v797_v41, 3 }
 0x14f   :  { %v719_v50 = vmul.f32 0.5, %v2179_v49 }
 0x151   :  { %v720_v51 = vmul.f32 1.442695, %v719_v50  ;;  %v1689_v50 = vld [vmem:[%s2496_s8 + $0xe0] sm:$0xf0] }
 0x152   :  { %v1692_v58 = vor.u32 %v1827_v48, %v1689_v50 }
 0x153   :  { %1844 = vpow2.f32 %v720_v51  ;;  %v1695_v51 = vld [vmem:[%s2496_s8 + $0xa8] sm:$0xf] }
 0x154   :  { %v716_v52 = vpop.f32.mrf.mxu0 }
 0x155   :  { %v1836_v52 = vld [vmem:[%s2496_s8 + $0xe4] sm:$0xf0] }
 0x156   :  { %v1696_v61 = vor.u32 %v1836_v52, %v1695_v51  ;;  %v801_v51 = vperm.slane %v797_v41, 0  ;;  %v802_v52 = vperm.slane %v797_v41, 1 }
 0x159   :  { %v1845_v53 = vpop.eup %1844 }
 0x15a   :  { %723 = vrot.lane.b32.xlu0 %v1845_v53, %s1880_s27 }
 0x1cc   :  { %v724_v9 = vpop.permute.xlu0 %723 }
 0x1cd   :  { %v726_v10 = vmul.f32 %v724_v9, %v718_v8  ;;  %v1632_v8 = vor.u32 %v1820_v2, %v1631_v1  ;;  %v1636_v9 = vor.u32 %v1812_v3, %v1633_v4 }
 0x1cf   :  { %v2222_v11 = vadd.f32 %v726_v10, %v2179_v49  ;;  %v1703_v10 = vld [vmem:[%s2496_s8 + $0xb0] sm:$0xf] }
 0x1d1   :  { %v736_v12 = vpack.c.bf16 %v2222_v11, %v2222_v11 }
 0x1d3   :  { %1588 = vmatmul.msk.bf16.vlgmr.msra.gmra.mxu1 %vm742_vm2, %v736_v12  ;;  %v1837_v12 = vld [vmem:[%s2496_s8 + $0xec] sm:$0xf0] }
 0x1d4   :  { %1093 = vmatpush.bf16.msra.mxu1 %v1684_v31  ;;  %v1704_v19 = vor.u32 %v1837_v12, %v1703_v10  ;;  %v1640_v31 = vor.u32 %v1821_v22, %v1639_v21 }
 0x1d8   :  { %1094 = vmatpush.bf16.msra.mxu1 %v1620_v42 }
 0x250   :  { %v759_v44 = vpop.f32.mrf.mxu1 }
 0x251   :  { %v760_v45 = vadd.f32 %v1843_v43, %v759_v44  ;;  %v807_v44 = vperm.slane %v797_v41, 6 }
 0x253   :  { %v763_v53 = vmax.f32 %v760_v45, 0.0  ;;  %v808_v45 = vperm.slane %v797_v41, 7 }
 0x255   :  { %v2313_v56 = vpack.c.bf16 %v763_v53, %v763_v53 }
 0x257   :  { %1717 = vmatmul.msk.bf16.vlgmr.msra.gmra.mxu2 %vm701_vm0, %v2313_v56  ;;  %1718 = vmatmul.msk.bf16.vlgmr.msra.gmra.mxu3 %vm701_vm0, %v2313_v56 }
 0x258   :  { %1719 = vmatmul.msk.bf16.vlgmr.msrb.gmra.mxu0 %vm701_vm0, %v2313_v56  ;;  %1720 = vmatmul.msk.bf16.vlgmr.msrb.gmra.mxu1 %vm701_vm0, %v2313_v56  ;;  %v761_v5 = vpop.f32.mrf.mxu1 }
 0x259   :  { %1106 = vmatpush.bf16.msra.mxu2 %v1688_v57  ;;  %1119 = vmatpush.bf16.msra.mxu3 %v1692_v58 }
 0x25a   :  { %1132 = vmatpush.bf16.msrb.mxu0 %v1696_v61  ;;  %1145 = vmatpush.bf16.msrb.mxu1 %v1700_v62 }
 0x25d   :  { %1107 = vmatpush.bf16.msra.mxu2 %v1624_v6  ;;  %1120 = vmatpush.bf16.msra.mxu3 %v1628_v7 }
 0x25e   :  { %1133 = vmatpush.bf16.msrb.mxu0 %v1632_v8  ;;  %1146 = vmatpush.bf16.msrb.mxu1 %v1636_v9  ;;  %v798_v9 = vld [vmem:[%s2498_s9 + $0x8] sm:$0xff] }
 0x25f   :  { %v811_v14 = vperm.slane %v798_v9, 2  ;;  %v812_v15 = vperm.slane %v798_v9, 3  ;;  %v810_v21 = vperm.slane %v798_v9, 1 }
 0x267   :  { %1721 = vmatmul.msk.bf16.vlgmr.msrb.gmra.mxu2 %vm701_vm0, %v2313_v56  ;;  %1722 = vmatmul.msk.bf16.vlgmr.msrb.gmra.mxu3 %vm701_vm0, %v2313_v56 }
 0x268   :  { %1723 = vmatmul.msk.bf16.vlgmr.msra.gmra.mxu0 %vm701_vm0, %v2313_v56  ;;  %1724 = vmatmul.msk.bf16.vlgmr.msra.gmra.mxu1 %vm701_vm0, %v2313_v56 }
 0x269   :  { %1158 = vmatpush.bf16.msrb.mxu2 %v1704_v19  ;;  %1171 = vmatpush.bf16.msrb.mxu3 %v1708_v20  ;;  %v809_v20 = vperm.slane %v798_v9, 0 }
 0x26a   :  { %1184 = vmatpush.bf16.msra.mxu0 %v1712_v23  ;;  %1197 = vmatpush.bf16.msra.mxu1 %v1716_v24 }
 0x26d   :  { %1159 = vmatpush.bf16.msrb.mxu2 %v1640_v31  ;;  %1172 = vmatpush.bf16.msrb.mxu3 %v1644_v32 }
 0x26e   :  { %1185 = vmatpush.bf16.msra.mxu0 %v1648_v33  ;;  %1198 = vmatpush.bf16.msra.mxu1 %v1652_v34 }
 0x277   :  { %1725 = vmatmul.msk.bf16.vlgmr.msra.gmra.mxu2 %vm701_vm0, %v2313_v56  ;;  %1726 = vmatmul.msk.bf16.vlgmr.msra.gmra.mxu3 %vm701_vm0, %v2313_v56 }
 0x278   :  { %1727 = vmatmul.msk.bf16.vlgmr.msrb.gmra.mxu0 %vm701_vm0, %v2313_v56  ;;  %1728 = vmatmul.msk.bf16.vlgmr.msrb.gmra.mxu1 %vm701_vm0, %v2313_v56 }
 0x287   :  { %1729 = vmatmul.msk.bf16.vlgmr.msrb.gmra.mxu2 %vm701_vm0, %v2313_v56  ;;  %1730 = vmatmul.msk.bf16.vlgmr.msrb.gmra.mxu3 %vm701_vm0, %v2313_v56 }
 0x288   :  { %1731 = vmatmul.msk.bf16.vlgmr.msra.gmra.mxu0 %vm701_vm0, %v2313_v56  ;;  %1732 = vmatmul.msk.bf16.vlgmr.msra.gmra.mxu1 %vm701_vm0, %v2313_v56  ;;  %v806_v56 = vperm.slane %v797_v41, 5 }
 0x2d5   :  { %v1031_v35 = vpop.f32.mrf.mxu0  ;;  %v1044_v36 = vpop.f32.mrf.mxu1 }
 0x2d6   :  { %v2426_v57 = vadd.f32 %v1031_v35, %v803_v46  ;;  %v2428_v58 = vadd.f32 %v1044_v36, %v804_v47 }
 0x2da   :  { %v1005_v37 = vpop.f32.mrf.mxu2  ;;  %v1018_v38 = vpop.f32.mrf.mxu3 }
 0x2db   :  { %v2430_v59 = vadd.f32 %v1005_v37, %v801_v51  ;;  %v2432_v60 = vadd.f32 %v1018_v38, %v802_v52 }
 0x2dd   :  { %v1033_v39 = vpop.f32.mrf.mxu0  ;;  %v1046_v40 = vpop.f32.mrf.mxu1 }
 0x2de   :  { %v815_v39 = vperm.slane %v798_v9, 6  ;;  %v816_v40 = vperm.slane %v798_v9, 7 }
 0x2e2   :  { %v1007_v42 = vpop.f32.mrf.mxu2  ;;  %v1020_v43 = vpop.f32.mrf.mxu3 }
 0x2e5   :  { %v1083_v48 = vpop.f32.mrf.mxu0  ;;  %v1096_v50 = vpop.f32.mrf.mxu1 }
 0x2e6   :  { %v2422_v53 = vadd.f32 %v1083_v48, %v807_v44  ;;  %v2424_v54 = vadd.f32 %v1096_v50, %v808_v45  ;;  %v813_v48 = vperm.slane %v798_v9, 4  ;;  %v814_v50 = vperm.slane %v798_v9, 5 }
 0x2e8   :  { %v1206_v63 = vmax.f32 %v2426_v57, %v2422_v53  ;;  %v1207_v0 = vmax.f32 %v2428_v58, %v2424_v54 }
 0x2ea   :  { %v1057_v61 = vpop.f32.mrf.mxu2  ;;  %v1070_v62 = vpop.f32.mrf.mxu3  ;;  %v1209_v8 = vmax.f32 %v1206_v63, %v1207_v0 }
 0x2eb   :  { %v2438_v1 = vadd.f32 %v1057_v61, %v805_v55  ;;  %v2440_v2 = vadd.f32 %v1070_v62, %v806_v56 }
 0x2ed   :  { %v1204_v3 = vmax.f32 %v2430_v59, %v2438_v1  ;;  %v1205_v4 = vmax.f32 %v2432_v60, %v2440_v2  ;;  %v1085_v5 = vpop.f32.mrf.mxu0  ;;  %v1098_v6 = vpop.f32.mrf.mxu1 }
 0x2ef   :  { %v1208_v7 = vmax.f32 %v1204_v3, %v1205_v4 }
 0x2f1   :  { %v1210_v10 = vmax.f32 %v1208_v7, %v1209_v8 }
 0x2f2   :  { %v1059_v12 = vpop.f32.mrf.mxu2  ;;  %v1072_v13 = vpop.f32.mrf.mxu3 }
 0x2f3   :  { %1211 = vmax.xlane.f32.xlu0 %v1210_v10 }
 0x2f5   :  { %v1135_v16 = vpop.f32.mrf.mxu0  ;;  %v1148_v17 = vpop.f32.mrf.mxu1 }
 0x2f6   :  { %v1136_v18 = vadd.f32 %v1135_v16, %v811_v14  ;;  %v1149_v19 = vadd.f32 %v1148_v17, %v812_v15 }
 0x2f8   :  { %v1735_v22 = vclamps-f32 %v1136_v18, 30.0  ;;  %v1736_v23 = vclamps-f32 %v1149_v19, 30.0 }
 0x2fa   :  { %v1295_v24 = vmul.f32 1.442695, %v1735_v22  ;;  %v1297_v25 = vmul.f32 1.442695, %v1736_v23  ;;  %v1109_v26 = vpop.f32.mrf.mxu2  ;;  %v1122_v27 = vpop.f32.mrf.mxu3 }
 0x2fb   :  { %v1110_v28 = vadd.f32 %v1109_v26, %v809_v20  ;;  %v1123_v29 = vadd.f32 %v1122_v27, %v810_v21 }
 0x2fc   :  { %1846 = vpow2.f32 %v1295_v24 }
 0x2fd   :  { %1848 = vpow2.f32 %v1297_v25  ;;  %v1733_v30 = vclamps-f32 %v1110_v28, 30.0  ;;  %v1734_v31 = vclamps-f32 %v1123_v29, 30.0  ;;  %v1137_v32 = vpop.f32.mrf.mxu0  ;;  %v1150_v33 = vpop.f32.mrf.mxu1 }
 0x2ff   :  { %v1291_v34 = vmul.f32 1.442695, %v1733_v30  ;;  %v1293_v35 = vmul.f32 1.442695, %v1734_v31 }
 0x301   :  { %1850 = vpow2.f32 %v1291_v34 }
 0x302   :  { %v1847_v36 = vpop.eup %1846  ;;  %1852 = vpow2.f32 %v1293_v35  ;;  %v1111_v37 = vpop.f32.mrf.mxu2 }
 0x303   :  { %v1124_v38 = vpop.f32.mrf.mxu3  ;;  %v1849_v41 = vpop.eup %1848 }
 0x304   :  { %v1308_v42 = vpack.c.bf16 %v1849_v41, %v1847_v36 }
 0x305   :  { %v1187_v43 = vpop.f32.mrf.mxu0  ;;  %v1200_v44 = vpop.f32.mrf.mxu1 }
 0x306   :  { %1312 = vst [vmem:[%s2499_s11 + $0x28] sm:$0xff] %v1308_v42  ;;  %v1188_v45 = vadd.f32 %v1187_v43, %v815_v39  ;;  %v1201_v46 = vadd.f32 %v1200_v44, %v816_v40 }
 0x307   :  { %v1851_v47 = vpop.eup %1850 }
 0x308   :  { %v1853_v51 = vpop.eup %1852  ;;  %v1739_v52 = vclamps-f32 %v1188_v45, 30.0  ;;  %v1740_v55 = vclamps-f32 %v1201_v46, 30.0 }
 0x309   :  { %v1307_v56 = vpack.c.bf16 %v1853_v51, %v1851_v47 }
 0x30a   :  { %v1303_v61 = vmul.f32 1.442695, %v1739_v52  ;;  %v1305_v62 = vmul.f32 1.442695, %v1740_v55  ;;  %v1161_v63 = vpop.f32.mrf.mxu2 }
 0x30b   :  { %v1174_v0 = vpop.f32.mrf.mxu3  ;;  %1311 = vst [vmem:[%s2499_s11 + $0x20] sm:$0xff] %v1307_v56  ;;  %v1162_v3 = vadd.f32 %v1161_v63, %v813_v48 }
 0x30c   :  { %v1175_v4 = vadd.f32 %v1174_v0, %v814_v50  ;;  %1854 = vpow2.f32 %v1303_v61  ;;  %v1258_v50 = vstv %s2500_s10 }
 0x30d   :  { %1856 = vpow2.f32 %v1305_v62  ;;  %v1737_v5 = vclamps-f32 %v1162_v3, 30.0  ;;  %v1189_v7 = vpop.f32.mrf.mxu0  ;;  %v1202_v8 = vpop.f32.mrf.mxu1 }
 0x30e   :  { %v1738_v6 = vclamps-f32 %v1175_v4, 30.0 }
 0x30f   :  { %v1299_v9 = vmul.f32 1.442695, %v1737_v5 }
 0x310   :  { %v1301_v10 = vmul.f32 1.442695, %v1738_v6 }
 0x311   :  { %1858 = vpow2.f32 %v1299_v9 }
 0x312   :  { %v1855_v12 = vpop.eup %1854  ;;  %1860 = vpow2.f32 %v1301_v10  ;;  %v1163_v13 = vpop.f32.mrf.mxu2 }
 0x313   :  { %v1176_v14 = vpop.f32.mrf.mxu3  ;;  %v1857_v15 = vpop.eup %1856 }
 0x314   :  { %v1310_v16 = vpack.c.bf16 %v1857_v15, %v1855_v12 }
 0x316   :  { %1314 = vst [vmem:[%s2499_s11 + $0x38] sm:$0xff] %v1310_v16 }
 0x317   :  { %v1859_v17 = vpop.eup %1858 }
 0x318   :  { %v1861_v18 = vpop.eup %1860 }
 0x319   :  { %v1309_v19 = vpack.c.bf16 %v1861_v18, %v1859_v17 }
 0x31b   :  { %1313 = vst [vmem:[%s2499_s11 + $0x30] sm:$0xff] %v1309_v19 }
 0x366   :  { %v1212_v20 = vpop.xlane.xlu0 %1211 }
 0x367   :  { %v1213_v21 = vsub.f32 %v2430_v59, %v1212_v20  ;;  %v1214_v22 = vsub.f32 %v2432_v60, %v1212_v20  ;;  %v1215_v23 = vsub.f32 %v2426_v57, %v1212_v20  ;;  %v1216_v24 = vsub.f32 %v2428_v58, %v1212_v20 }
 0x368   :  { %v1217_v28 = vsub.f32 %v2438_v1, %v1212_v20  ;;  %v1218_v29 = vsub.f32 %v2440_v2, %v1212_v20  ;;  %v1219_v31 = vsub.f32 %v2422_v53, %v1212_v20  ;;  %v1220_v60 = vsub.f32 %v2424_v54, %v1212_v20 }
 0x369   :  { %v1221_v25 = vmul.f32 1.442695, %v1213_v21  ;;  %v1223_v26 = vmul.f32 1.442695, %v1214_v22  ;;  %v1225_v27 = vmul.f32 1.442695, %v1215_v23 }
 0x36a   :  { %v1227_v30 = vmul.f32 1.442695, %v1216_v24  ;;  %v1229_v59 = vmul.f32 1.442695, %v1217_v28  ;;  %v1231_v57 = vmul.f32 1.442695, %v1218_v29 }
 0x36b   :  { %1862 = vpow2.f32 %v1221_v25  ;;  %v1233_v33 = vmul.f32 1.442695, %v1219_v31  ;;  %v1235_v1 = vmul.f32 1.442695, %v1220_v60 }
 0x36c   :  { %1864 = vpow2.f32 %v1223_v26 }
 0x36d   :  { %1866 = vpow2.f32 %v1225_v27 }
 0x36e   :  { %1868 = vpow2.f32 %v1227_v30 }
 0x36f   :  { %1870 = vpow2.f32 %v1229_v59 }
 0x370   :  { %1872 = vpow2.f32 %v1231_v57 }
 0x371   :  { %v1863_v32 = vpop.eup %1862  ;;  %1874 = vpow2.f32 %v1233_v33 }
 0x372   :  { %v1865_v58 = vpop.eup %1864  ;;  %1876 = vpow2.f32 %v1235_v1 }
 0x373   :  { %v1237_v34 = vadd.f32 %v1865_v58, %v1863_v32  ;;  %v1867_v35 = vpop.eup %1866 }
 0x374   :  { %v1869_v37 = vpop.eup %1868 }
 0x375   :  { %v1238_v36 = vadd.f32 %v1867_v35, %v1237_v34  ;;  %v1871_v38 = vpop.eup %1870 }
 0x376   :  { %v1873_v39 = vpop.eup %1872 }
 0x377   :  { %v1239_v2 = vadd.f32 %v1869_v37, %v1238_v36  ;;  %v1875_v54 = vpop.eup %1874 }
 0x378   :  { %v1877_v42 = vpop.eup %1876 }
 0x379   :  { %v1240_v53 = vadd.f32 %v1871_v38, %v1239_v2 }
 0x37b   :  { %v1241_v40 = vadd.f32 %v1873_v39, %v1240_v53 }
 0x37d   :  { %v1242_v41 = vadd.f32 %v1875_v54, %v1241_v40 }
 0x37f   :  { %v1243_v43 = vadd.f32 %v1877_v42, %v1242_v41 }
 0x381   :  { %1244 = vadd.xlane.f32.xlu1 %v1243_v43 }
 0x39a   :  { %729 = vrot.lane.b32.xlu1 %v2222_v11, %s1881_s21 }
 0x3f4   :  { %v1245_v44 = vpop.xlane.xlu1 %1244 }
 0x3f5   :  { %1878 = vrcp.f32 %v1245_v44 }
 0x3fb   :  { %v1879_v45 = vpop.eup %1878 }
 0x3fc   :  { %v1247_v46 = vmul.f32 %v1879_v45, %v1245_v44 }
 0x3fe   :  { %v1248_v47 = vsub.f32 2.0, %v1247_v46 }
 0x400   :  { %v1249_v48 = vmul.f32 %v1879_v45, %v1248_v47 }
 0x402   :  { %v1250_v51 = vmul.f32 %v1863_v32, %v1249_v48  ;;  %v1251_v52 = vmul.f32 %v1865_v58, %v1249_v48  ;;  %v1252_v55 = vmul.f32 %v1867_v35, %v1249_v48  ;;  %v1253_v56 = vmul.f32 %v1869_v37, %v1249_v48 }
 0x403   :  { %v1254_v61 = vmul.f32 %v1871_v38, %v1249_v48  ;;  %v1255_v62 = vmul.f32 %v1873_v39, %v1249_v48  ;;  %v1256_v63 = vmul.f32 %v1875_v54, %v1249_v48  ;;  %v1257_v0 = vmul.f32 %v1877_v42, %v1249_v48 }
 0x404   :  { %v1259_v3 = vmul.f32 %v1258_v50, %v1250_v51  ;;  %v1260_v11 = vmul.f32 %v1258_v50, %v1251_v52  ;;  %v1261_v4 = vmul.f32 %v1258_v50, %v1252_v55  ;;  %v1262_v5 = vmul.f32 %v1258_v50, %v1253_v56 }
 0x405   :  { %v1263_v6 = vmul.f32 %v1258_v50, %v1254_v61  ;;  %v1264_v7 = vmul.f32 %v1258_v50, %v1255_v62  ;;  %v1265_v8 = vmul.f32 %v1258_v50, %v1256_v63  ;;  %v1266_v9 = vmul.f32 %v1258_v50, %v1257_v0 }
 0x406   :  { %v1267_v10 = vpack.c.bf16 %v1260_v11, %v1259_v3  ;;  %v1268_v12 = vpack.c.bf16 %v1262_v5, %v1261_v4 }
 0x407   :  { %v1269_v13 = vpack.c.bf16 %v1264_v7, %v1263_v6  ;;  %v1270_v14 = vpack.c.bf16 %v1266_v9, %v1265_v8 }
 0x408   :  { %1271 = vst [vmem:[%s2499_s11] sm:$0xff] %v1267_v10 }
 0x409   :  { %1272 = vst [vmem:[%s2499_s11 + $0x8] sm:$0xff] %v1268_v12 }
 0x40a   :  { %1273 = vst [vmem:[%s2499_s11 + $0x10] sm:$0xff] %v1269_v13 }
 0x40b   :  { %1274 = vst [vmem:[%s2499_s11 + $0x18] sm:$0xff] %v1270_v14 }
 0x40c   :  { %v730_v15 = vpop.permute.xlu1 %729 }
 0x40d   :  { %v733_v16 = vsel %vm732_vm3, %v2179_v49, %v730_v15 }
 0x40e   :  { %735 = vst.msk [vmem:[%s2501_s12] sm:$0xff] %vm734_vm4, %v733_v16 }

</bundles_post_ra>
